<compile_context>
chip_gen: v5e
topology: v5e:2x2
jax: 0.10.0
libtpu: 0.0.40
codegen_flags: <defaults>
</compile_context>

<pallas_src>
import functools

import jax
import jax.numpy as jnp
from jax.experimental import pallas as pl
from jax.experimental.pallas import tpu as pltpu


# ----------------------------------------------------------------------------
# Tiling helpers.
# ----------------------------------------------------------------------------
_TM_MAX = 256          # v7x-safe row tile
_TN_MAX = 256          # v7x-safe lane tile (multiple of 128)
_TK_MAX = 512          # contraction tile
_VMEM_LIMIT = 32 * 1024 * 1024   # safe on v5e/v6e/v7x; far above our tile needs


def _round_up(v, m):
    return ((v + m - 1) // m) * m


def _pad2(x, rows, cols):
    r, c = x.shape
    if r == rows and c == cols:
        return x
    return jnp.pad(x, ((0, rows - r), (0, cols - c)))


def _choose_m_tile(m, max_tile=_TM_MAX):
    """Row (sublane) tile: <= max_tile, multiple of 8, and split so the
    'parallel' row axis has >= 2 blocks when possible (feeds both v7x TCs)."""
    mp = _round_up(m, 8)
    tm = min(max_tile, mp)
    if mp // tm < 2 and mp >= 16:
        tm = _round_up((mp + 1) // 2, 8)
    return tm


# ----------------------------------------------------------------------------
# Kernel 1: generic tiled matmul, f32 accumulation directly in the resident
# output block; optional fused bias + ReLU epilogue.
# ----------------------------------------------------------------------------
def _mm_kernel(a_ref, b_ref, o_ref, *, activation):
    k = pl.program_id(2)

    @pl.when(k == 0)
    def _():
        o_ref[...] = jnp.zeros_like(o_ref)

    o_ref[...] += jnp.dot(a_ref[...], b_ref[...],
                          preferred_element_type=jnp.float32)

    if activation == "relu":
        @pl.when(k == pl.num_programs(2) - 1)
        def _():
            o_ref[...] = jnp.maximum(o_ref[...], 0.0)


def _mm_bias_kernel(a_ref, b_ref, bias_ref, o_ref, *, activation):
    k = pl.program_id(2)

    @pl.when(k == 0)
    def _():
        o_ref[...] = jnp.zeros_like(o_ref)

    o_ref[...] += jnp.dot(a_ref[...], b_ref[...],
                          preferred_element_type=jnp.float32)

    @pl.when(k == pl.num_programs(2) - 1)
    def _():
        r = o_ref[...] + bias_ref[...]
        if activation == "relu":
            r = jnp.maximum(r, 0.0)
        o_ref[...] = r


def pallas_matmul(a, b, bias=None, activation=None):
    """out = act(a @ b + bias); bf16 MXU inputs, f32 accumulation/output."""
    M, K = a.shape
    K2, N = b.shape
    assert K == K2, (a.shape, b.shape)

    tm = _choose_m_tile(M)
    tn = min(_TN_MAX, _round_up(N, 128))
    tk = min(_TK_MAX, _round_up(K, 128))
    Mp, Kp, Np = _round_up(M, tm), _round_up(K, tk), _round_up(N, tn)

    a_p = _pad2(a.astype(jnp.float32), Mp, Kp).astype(jnp.bfloat16)
    b_p = _pad2(b.astype(jnp.float32), Kp, Np).astype(jnp.bfloat16)

    grid = (Mp // tm, Np // tn, Kp // tk)
    in_specs = [
        pl.BlockSpec((tm, tk), lambda i, j, k: (i, k)),
        pl.BlockSpec((tk, tn), lambda i, j, k: (k, j)),
    ]
    operands = [a_p, b_p]
    if bias is not None:
        bias_p = _pad2(bias.reshape(1, N).astype(jnp.float32), 1, Np)
        in_specs.append(pl.BlockSpec((1, tn), lambda i, j, k: (0, j)))
        operands.append(bias_p)
        kernel = functools.partial(_mm_bias_kernel, activation=activation)
    else:
        kernel = functools.partial(_mm_kernel, activation=activation)

    out = pl.pallas_call(
        kernel,
        out_shape=jax.ShapeDtypeStruct((Mp, Np), jnp.float32),
        grid_spec=pltpu.PrefetchScalarGridSpec(
            num_scalar_prefetch=0,
            grid=grid,
            in_specs=in_specs,
            out_specs=pl.BlockSpec((tm, tn), lambda i, j, k: (i, j)),
        ),
        compiler_params=pltpu.CompilerParams(
            dimension_semantics=("parallel", "parallel", "arbitrary"),
            vmem_limit_bytes=_VMEM_LIMIT),
    )(*operands)
    return out[:M, :N]


# ----------------------------------------------------------------------------
# Kernel 2: fused GCN layer  relu((A_hat @ X) @ W + b).
# AX is accumulated in a VMEM scratch (never written to HBM); W and bias stay
# resident in VMEM; the transform + bias + ReLU run in the k==last epilogue.
# ----------------------------------------------------------------------------
def _gcn_fused_kernel(a_ref, x_ref, w_ref, bias_ref, o_ref, ax_ref):
    k = pl.program_id(1)

    @pl.when(k == 0)
    def _():
        ax_ref[...] = jnp.zeros_like(ax_ref)

    ax_ref[...] += jnp.dot(a_ref[...], x_ref[...],
                           preferred_element_type=jnp.float32)

    @pl.when(k == pl.num_programs(1) - 1)
    def _():
        h = jnp.dot(ax_ref[...].astype(jnp.bfloat16), w_ref[...],
                    preferred_element_type=jnp.float32)
        o_ref[...] = jnp.maximum(h + bias_ref[...], 0.0)


def fused_gcn_layer(a_hat, x, w, b):
    Nn, Nn2 = a_hat.shape
    F, H = w.shape
    assert x.shape == (Nn2, F)

    tm = _choose_m_tile(Nn)
    tk = min(_TK_MAX, _round_up(Nn2, 128))
    Fp = _round_up(F, 128)
    Hp = _round_up(H, 128)
    Mp = _round_up(Nn, tm)
    Kp = _round_up(Nn2, tk)

    a_p = _pad2(a_hat.astype(jnp.float32), Mp, Kp).astype(jnp.bfloat16)
    x_p = _pad2(x.astype(jnp.float32), Kp, Fp).astype(jnp.bfloat16)
    w_p = _pad2(w.astype(jnp.float32), Fp, Hp).astype(jnp.bfloat16)
    b_p = _pad2(b.reshape(1, H).astype(jnp.float32), 1, Hp)

    grid = (Mp // tm, Kp // tk)

    out = pl.pallas_call(
        _gcn_fused_kernel,
        out_shape=jax.ShapeDtypeStruct((Mp, Hp), jnp.float32),
        grid_spec=pltpu.PrefetchScalarGridSpec(
            num_scalar_prefetch=0,
            grid=grid,
            in_specs=[
                pl.BlockSpec((tm, tk), lambda i, k: (i, k)),
                pl.BlockSpec((tk, Fp), lambda i, k: (k, 0)),
                pl.BlockSpec((Fp, Hp), lambda i, k: (0, 0)),   # W resident
                pl.BlockSpec((1, Hp), lambda i, k: (0, 0)),    # bias resident
            ],
            out_specs=pl.BlockSpec((tm, Hp), lambda i, k: (i, 0)),
            scratch_shapes=[pltpu.VMEM((tm, Fp), jnp.float32)],
        ),
        compiler_params=pltpu.CompilerParams(
            dimension_semantics=("parallel", "arbitrary"),
            vmem_limit_bytes=_VMEM_LIMIT),
    )(a_p, x_p, w_p, b_p)
    return out[:Nn, :H]


# ----------------------------------------------------------------------------
# Kernel 3: diffusion  A2 = A_hat @ A_hat  plus fused per-row sums
# (row sums emitted as a second output, resident across the j and k axes,
#  saving one full [N,N] read for the subsequent re-normalization).
# ----------------------------------------------------------------------------
def _diffusion_kernel(a_ref, b_ref, o_ref, rs_ref):
    j = pl.program_id(1)
    k = pl.program_id(2)

    @pl.when(k == 0)
    def _():
        o_ref[...] = jnp.zeros_like(o_ref)

    @pl.when((j == 0) & (k == 0))
    def _():
        rs_ref[...] = jnp.zeros_like(rs_ref)

    o_ref[...] += jnp.dot(a_ref[...], b_ref[...],
                          preferred_element_type=jnp.float32)

    @pl.when(k == pl.num_programs(2) - 1)
    def _():
        rs_ref[...] += jnp.sum(o_ref[...], axis=1, keepdims=True)


def pallas_diffusion(a_hat):
    Nn = a_hat.shape[0]
    tm = _choose_m_tile(Nn)
    tn = min(_TN_MAX, _round_up(Nn, 128))
    tk = min(_TK_MAX, _round_up(Nn, 128))
    Mp = _round_up(Nn, tm)
    Np_ = _round_up(Nn, tn)
    Kp = _round_up(Nn, tk)

    a32 = a_hat.astype(jnp.float32)
    a_l = _pad2(a32, Mp, Kp).astype(jnp.bfloat16)
    a_r = _pad2(a32, Kp, Np_).astype(jnp.bfloat16)

    grid = (Mp // tm, Np_ // tn, Kp // tk)

    a2, rs = pl.pallas_call(
        _diffusion_kernel,
        out_shape=(jax.ShapeDtypeStruct((Mp, Np_), jnp.float32),
                   jax.ShapeDtypeStruct((Mp, 1), jnp.float32)),
        grid_spec=pltpu.PrefetchScalarGridSpec(
            num_scalar_prefetch=0,
            grid=grid,
            in_specs=[
                pl.BlockSpec((tm, tk), lambda i, j, k: (i, k)),
                pl.BlockSpec((tk, tn), lambda i, j, k: (k, j)),
            ],
            out_specs=[
                pl.BlockSpec((tm, tn), lambda i, j, k: (i, j)),
                pl.BlockSpec((tm, 1), lambda i, j, k: (i, 0)),
            ],
        ),
        compiler_params=pltpu.CompilerParams(
            dimension_semantics=("parallel", "arbitrary", "arbitrary"),
            vmem_limit_bytes=_VMEM_LIMIT),
    )(a_l, a_r)
    return a2[:Nn, :Nn], rs[:Nn]


# ----------------------------------------------------------------------------
# Graph glue (plain JAX): adjacency normalization, augmentations, pooling.
# ----------------------------------------------------------------------------
def normalize_adj(adj):
    deg = adj.sum(axis=-1)
    d_inv_sqrt = jnp.where(deg > 0, 1.0 / jnp.sqrt(jnp.maximum(deg, 1e-12)), 0.0)
    return adj * d_inv_sqrt[:, None] * d_inv_sqrt[None, :]


def aug_identity(x, adj):
    """aug1: identity view -> (x, sym-normalized adjacency with self loops)."""
    n = adj.shape[0]
    a_hat = normalize_adj(adj + jnp.eye(n, dtype=adj.dtype))
    return x, a_hat


def aug_diffusion(x, adj):
    """aug2: two-hop diffusion view (A_hat @ A_hat, re-normalized)."""
    n = adj.shape[0]
    a_hat = normalize_adj(adj + jnp.eye(n, dtype=adj.dtype))
    a2, row_sums = pallas_diffusion(a_hat)                 # matmul + row sums fused
    d_inv_sqrt = jnp.where(row_sums > 0,
                           1.0 / jnp.sqrt(jnp.maximum(row_sums, 1e-12)), 0.0)
    a2_norm = a2 * d_inv_sqrt * d_inv_sqrt.T               # single elementwise pass
    return x, a2_norm


def mean_pool(h, batch, num_graphs):
    """Graph mean pooling; bandwidth-trivial -> plain JAX/XLA, no Pallas dispatch."""
    onehot = (batch[None, :] == jnp.arange(num_graphs)[:, None]).astype(h.dtype)
    counts = onehot.sum(axis=1, keepdims=True)
    return (onehot @ h) / jnp.maximum(counts, 1.0)


# ----------------------------------------------------------------------------
# GCN / MLP forward, built from the Pallas kernels.
# ----------------------------------------------------------------------------
def gcn_layer(a_hat, x, w, b):
    f_in, f_out = w.shape
    if f_in <= f_out:
        # propagate first: N^2 term scales with the smaller feature dim
        return fused_gcn_layer(a_hat, x, w, b)                 # relu((A@X)@W + b)
    # transform first when in_dim > hidden (cuts the N^2-scaled FLOPs)
    xw = pallas_matmul(x, w)
    return pallas_matmul(a_hat, xw, bias=b, activation="relu")


def gcn_backbone(params, a_hat, x):
    h = gcn_layer(a_hat, x, params["w1"], params["b1"])
    h = gcn_layer(a_hat, h, params["w2"], params["b2"])
    return h


def mlp_forward(params, x):
    h = pallas_matmul(x, params["w1"], bias=params["b1"], activation="relu")
    return pallas_matmul(h, params["w2"], bias=params["b2"])


@jax.jit
def precompute_views(x, adj):
    """aug1/aug2 hoisted out of the hot path (graph is static across steps)."""
    x1, a1 = aug_identity(x, adj)
    x2, a2 = aug_diffusion(x, adj)
    return x1, a1, x2, a2


@functools.partial(jax.jit, static_argnames=("num_graphs",))
def encoder_forward(params, x1, a1, x2, a2, batch, num_graphs):
    z1 = gcn_backbone(params["gcn1"], a1, x1)
    z2 = gcn_backbone(params["gcn2"], a2, x2)
    g1 = mean_pool(z1, batch, num_graphs)
    g2 = mean_pool(z2, batch, num_graphs)
    h1 = mlp_forward(params["mlp1"], z1)
    h2 = mlp_forward(params["mlp1"], z2)   # shared node-level head (matches spec)
    g1 = mlp_forward(params["mlp2"], g1)
    g2 = mlp_forward(params["mlp2"], g2)
    return h1, h2, g1, g2

# TODO(synk): self.noise / get_embedding path is not implemented (forward() only).


# ----------------------------------------------------------------------------
# Pure-JAX f32 reference (for numerical validation of the bf16 kernels).
# ----------------------------------------------------------------------------
def reference_forward(params, x, adj, batch, num_graphs):
    n = adj.shape[0]
    a1 = normalize_adj(adj + jnp.eye(n, dtype=adj.dtype))
    a2 = normalize_adj(a1 @ a1)

    def gcn(p, a, h):
        h = jnp.maximum((a @ h) @ p["w1"] + p["b1"], 0.0)
        h = jnp.maximum((a @ h) @ p["w2"] + p["b2"], 0.0)
        return h

    def mlp(p, h):
        return jnp.maximum(h @ p["w1"] + p["b1"], 0.0) @ p["w2"] + p["b2"]

    z1, z2 = gcn(params["gcn1"], a1, x), gcn(params["gcn2"], a2, x)
    g1, g2 = mean_pool(z1, batch, num_graphs), mean_pool(z2, batch, num_graphs)
    return (mlp(params["mlp1"], z1), mlp(params["mlp1"], z2),
            mlp(params["mlp2"], g1), mlp(params["mlp2"], g2))


# ----------------------------------------------------------------------------
# Deterministic parameter / input construction.
# ----------------------------------------------------------------------------
def init_params(key, in_dim, hidden, proj):
    ks = jax.random.split(key, 8)

    def lin(kw, fan_in, fan_out):
        scale = 1.0 / jnp.sqrt(jnp.float32(fan_in))
        return scale * jax.random.normal(kw, (fan_in, fan_out), jnp.float32)

    def gcn(k0, k1):
        return {"w1": lin(k0, in_dim, hidden), "b1": jnp.zeros((hidden,), jnp.float32),
                "w2": lin(k1, hidden, hidden), "b2": jnp.zeros((hidden,), jnp.float32)}

    def mlp(k0, k1, d_in):
        return {"w1": lin(k0, d_in, hidden), "b1": jnp.zeros((hidden,), jnp.float32),
                "w2": lin(k1, hidden, proj), "b2": jnp.zeros((proj,), jnp.float32)}

    return {
        "gcn1": gcn(ks[0], ks[1]),
        "gcn2": gcn(ks[2], ks[3]),
        "mlp1": mlp(ks[4], ks[5], hidden),   # node-level projection head
        "mlp2": mlp(ks[6], ks[7], hidden),   # graph-level projection head
    }


def _rel_err(a, b):
    return float(jnp.linalg.norm(a - b) / (jnp.linalg.norm(b) + 1e-6))


if __name__ == "__main__":
    key = jax.random.PRNGKey(0)
    # Lane-dense feature dims (multiples of 128) keep the out_spec unmasked.
    N, IN_DIM, HIDDEN, PROJ, G = 256, 128, 128, 128, 2

    k_x, k_p = jax.random.split(key)
    x = jax.random.normal(k_x, (N, IN_DIM), jnp.float32)

    # Deterministic graph: two disjoint 128-node rings; batch assigns nodes->graphs.
    per = N // G
    src, dst = [], []
    for g in range(G):
        for i in range(per):
            a = g * per + i
            b = g * per + (i + 1) % per
            src += [a, b]
            dst += [b, a]
    adj = jnp.zeros((N, N), jnp.float32).at[
        jnp.array(src, jnp.int32), jnp.array(dst, jnp.int32)].set(1.0)
    batch = jnp.repeat(jnp.arange(G, dtype=jnp.int32), per)

    params = init_params(k_p, IN_DIM, HIDDEN, PROJ)

    # Static-graph view precompute (done once), then the encoder hot path.
    x1, a1, x2, a2 = precompute_views(x, adj)
    h1, h2, g1, g2 = encoder_forward(params, x1, a1, x2, a2, batch, G)
    jax.block_until_ready((h1, h2, g1, g2))

    assert h1.shape == (N, PROJ) and h2.shape == (N, PROJ)
    assert g1.shape == (G, PROJ) and g2.shape == (G, PROJ)

    # Validate bf16-input / f32-accumulate kernels against the f32 reference.
    r1, r2, r3, r4 = reference_forward(params, x, adj, batch, G)
    errs = [_rel_err(h1, r1), _rel_err(h2, r2), _rel_err(g1, r3), _rel_err(g2, r4)]
    assert max(errs) < 5e-2, f"relative errors too large: {errs}"

    print("KERNEL_OK")
</pallas_src>

<mosaic_0001>
module attributes {stable_mosaic.version = 11 : i64} {
  func.func @_diffusion_kernel(%arg0: i32, %arg1: i32, %arg2: i32, %arg3: memref<128x256xbf16, #tpu.memory_space<vmem>>, %arg4: memref<256x256xbf16, #tpu.memory_space<vmem>>, %arg5: memref<128x256xf32, #tpu.memory_space<vmem>>, %arg6: memref<128x1xf32, #tpu.memory_space<vmem>>) attributes {dimension_semantics = [#tpu.dimension_semantics<parallel>, #tpu.dimension_semantics<arbitrary>, #tpu.dimension_semantics<arbitrary>], iteration_bounds = array<i64: 2, 1, 1>, scalar_prefetch = 0 : i64, scratch_operands = 0 : i64, tpu.core_type = #tpu.core_type<tc>, window_params = [{transform_indices = @transform_0, window_bounds = array<i64: 128, 256>}, {transform_indices = @transform_1, window_bounds = array<i64: 256, 256>}, {transform_indices = @transform_2, window_bounds = array<i64: 128, 256>}, {transform_indices = @transform_3, window_bounds = array<i64: 128, 1>}]} {
    %c0_i32 = arith.constant 0 : i32
    %0 = arith.cmpi eq, %arg2, %c0_i32 : i32
    %1 = arith.extui %0 : i1 to i32
    %c0_i32_0 = arith.constant 0 : i32
    %2 = arith.cmpi ne, %1, %c0_i32_0 : i32
    scf.if %2 {
      %cst_13 = arith.constant 0.000000e+00 : f32
      %17 = vector.broadcast %cst_13 : f32 to vector<128x256xf32>
      %c0_14 = arith.constant 0 : index
      %c0_15 = arith.constant 0 : index
      %18 = vector.load %arg5[%c0_14, %c0_15] : memref<128x256xf32, #tpu.memory_space<vmem>>, vector<128x256xf32>
      tpu.vector_store %arg5[%c0_14, %c0_15], %17 {strides = array<i32>} : memref<128x256xf32, #tpu.memory_space<vmem>>, vector<128x256xf32>,
    } else {
    }
    %c0_i32_1 = arith.constant 0 : i32
    %3 = arith.cmpi eq, %arg1, %c0_i32_1 : i32
    %c0_i32_2 = arith.constant 0 : i32
    %4 = arith.cmpi eq, %arg2, %c0_i32_2 : i32
    %5 = arith.andi %3, %4 : i1
    %6 = arith.extui %5 : i1 to i32
    %c0_i32_3 = arith.constant 0 : i32
    %7 = arith.cmpi ne, %6, %c0_i32_3 : i32
    scf.if %7 {
      %cst_13 = arith.constant 0.000000e+00 : f32
      %17 = vector.broadcast %cst_13 : f32 to vector<128x1xf32>
      %c0_14 = arith.constant 0 : index
      %c0_15 = arith.constant 0 : index
      %18 = vector.load %arg6[%c0_14, %c0_15] : memref<128x1xf32, #tpu.memory_space<vmem>>, vector<128x1xf32>
      tpu.vector_store %arg6[%c0_14, %c0_15], %17 {strides = array<i32>} : memref<128x1xf32, #tpu.memory_space<vmem>>, vector<128x1xf32>,
    } else {
    }
    %c0 = arith.constant 0 : index
    %c0_4 = arith.constant 0 : index
    %8 = vector.load %arg5[%c0, %c0_4] : memref<128x256xf32, #tpu.memory_space<vmem>>, vector<128x256xf32>
    %c0_5 = arith.constant 0 : index
    %c0_6 = arith.constant 0 : index
    %9 = vector.load %arg3[%c0_5, %c0_6] : memref<128x256xbf16, #tpu.memory_space<vmem>>, vector<128x256xbf16>
    %c0_7 = arith.constant 0 : index
    %c0_8 = arith.constant 0 : index
    %10 = vector.load %arg4[%c0_7, %c0_8] : memref<256x256xbf16, #tpu.memory_space<vmem>>, vector<256x256xbf16>
    %cst = arith.constant dense<0.000000e+00> : vector<128x256xf32>
    %11 = tpu.matmul %9, %10, %cst {dimension_numbers = #tpu.dot_dimension_numbers<[1], [0], [0], [1], [0, 0, 1, 1], [], []>} : vector<128x256xbf16>, vector<256x256xbf16>, vector<128x256xf32> -> vector<128x256xf32>
    %12 = arith.addf %8, %11 : vector<128x256xf32>
    %c0_9 = arith.constant 0 : index
    %c0_10 = arith.constant 0 : index
    %13 = vector.load %arg5[%c0_9, %c0_10] : memref<128x256xf32, #tpu.memory_space<vmem>>, vector<128x256xf32>
    tpu.vector_store %arg5[%c0_9, %c0_10], %12 {strides = array<i32>} : memref<128x256xf32, #tpu.memory_space<vmem>>, vector<128x256xf32>,
    %c0_i32_11 = arith.constant 0 : i32
    %14 = arith.cmpi eq, %arg2, %c0_i32_11 : i32
    %15 = arith.extui %14 : i1 to i32
    %c0_i32_12 = arith.constant 0 : i32
    %16 = arith.cmpi ne, %15, %c0_i32_12 : i32
    scf.if %16 {
      %c0_13 = arith.constant 0 : index
      %c0_14 = arith.constant 0 : index
      %17 = vector.load %arg6[%c0_13, %c0_14] : memref<128x1xf32, #tpu.memory_space<vmem>>, vector<128x1xf32>
      %c0_15 = arith.constant 0 : index
      %c0_16 = arith.constant 0 : index
      %18 = vector.load %arg5[%c0_15, %c0_16] : memref<128x256xf32, #tpu.memory_space<vmem>>, vector<128x256xf32>
      %cst_17 = arith.constant dense<0.000000e+00> : vector<128xf32>
      %19 = vector.multi_reduction <add>, %18, %cst_17 [1] : vector<128x256xf32> to vector<128xf32>
      %20 = vector.shape_cast %19 : vector<128xf32> to vector<128x1xf32>
      %21 = arith.addf %17, %20 : vector<128x1xf32>
      %c0_18 = arith.constant 0 : index
      %c0_19 = arith.constant 0 : index
      %22 = vector.load %arg6[%c0_18, %c0_19] : memref<128x1xf32, #tpu.memory_space<vmem>>, vector<128x1xf32>
      tpu.vector_store %arg6[%c0_18, %c0_19], %21 {strides = array<i32>} : memref<128x1xf32, #tpu.memory_space<vmem>>, vector<128x1xf32>,
    } else {
    }
    return
  }
  func.func @transform_0(%arg0: i32, %arg1: i32, %arg2: i32) -> (i32, i32) {
    %c0_i32 = arith.constant 0 : i32
    return %arg0, %arg2 : i32, i32
  }
  func.func @transform_1(%arg0: i32, %arg1: i32, %arg2: i32) -> (i32, i32) {
    %c0_i32 = arith.constant 0 : i32
    return %arg2, %arg1 : i32, i32
  }
  func.func @transform_2(%arg0: i32, %arg1: i32, %arg2: i32) -> (i32, i32) {
    %c0_i32 = arith.constant 0 : i32
    return %arg0, %arg1 : i32, i32
  }
  func.func @transform_3(%arg0: i32, %arg1: i32, %arg2: i32) -> (i32, i32) {
    %c0_i32 = arith.constant 0 : i32
    %c0_i32_0 = arith.constant 0 : i32
    return %arg0, %c0_i32 : i32, i32
  }
}

</mosaic_0001>

<bundles_post_ra>
// kernel: precompute_views.1
= control target key start
LH: loop header
LB: loop body
LE: loop exit
PB: predicated region body
PF: predicated region fallthrough
CT: control target
= control target key end

     0   :  { %s1526_s12 = smov 0   ;;  %s1528_s13 = smov 0   ;;  %s1915_s0 = inlined_call_operand.vmem [shape: bf16[256,256], index: 0, kind: input, shape index: {}, may-alias: {0,1}]   ;;  %s1916_s1 = inlined_call_operand.vmem [shape: bf16[256,256], index: 1, kind: input, shape index: {}, may-alias: {0,1}]   ;;  %s1917_s2 = inlined_call_operand.vmem [shape: f32[256,256], index: 2, kind: output, shape index: {0}]   ;;  %s1918_s3 = inlined_call_operand.vmem [shape: f32[256,1], index: 3, kind: output, shape index: {1}]  }
   0x1   :  { %s1530_s14 = smov 0  }
   0x2 LB: > { %s33_s15 = sadd.s32 1, %s1499_s13  ;;  %p1203_p0 = scmp.ge.s32.totalorder %s1503_s14, 1  ;;  %s1503_s14 = sphi %s1530_s14, %s14_s14   ;;  %s1499_s13 = sphi %s1528_s13, %s1920_s13   ;;  %s1495_s12 = sphi %s1526_s12, %s1919_s12  }
   0x3   : > { %p35_p1 = scmp.ge.s32.totalorder %s33_s15, 2  ;;  %p189_p2 = scmp.lt.s32.totalorder %s1503_s14, 3 }
   0x5   : > { %s1922_s15 = smov (%p35_p1, %s33_s15), 0  ;;  %p190_p3 = pnand %p1203_p0, %p189_p2 }
   0x6   : > { %s1204_s5 = sshll.u32 (!%p190_p3), %s1495_s12, 4 }
   0x7   : > { %193 = sbr.rel (%p190_p3) target bundleno = 423 (0x1a7), region = 28  ;;  %p240_p4 = scmp.lt.s32.totalorder (!%p190_p3), %s1204_s5, 31 }
   0xc   : > { %v1334_v0 = vld [vmem:[%s1916_s1 + $0x70] sm:$0xf]  ;;  %v1439_v1 = vld [vmem:[%s1916_s1 + $0x74] sm:$0xf0]  ;;  %v1438_v5 = vld [vmem:[%s1916_s1 + $0x74] sm:$0xf] }
   0xd   : > { %v1398_v2 = vld [vmem:[%s1916_s1 + $0xf0] sm:$0xf]  ;;  %v1335_v3 = vor.u32 %v1439_v1, %v1334_v0  ;;  %v1455_v4 = vld [vmem:[%s1916_s1 + $0xf4] sm:$0xf0]  ;;  %v1336_v6 = vld [vmem:[%s1916_s1 + $0x78] sm:$0xf0] }
   0xe   : > { %v1399_v7 = vor.u32 %v1455_v4, %v1398_v2  ;;  %v1339_v8 = vor.u32 %v1438_v5, %v1336_v6  ;;  %v1454_v9 = vld [vmem:[%s1916_s1 + $0xf4] sm:$0xf]  ;;  %v1400_v10 = vld [vmem:[%s1916_s1 + $0xf8] sm:$0xf0]  ;;  %v1326_v11 = vld [vmem:[%s1916_s1 + $0x60] sm:$0xf] }
   0xf   : > { %658 = vmatpush.bf16.msra.mxu0 %v1335_v3  ;;  %v1403_v12 = vor.u32 %v1454_v9, %v1400_v10  ;;  %v1437_v13 = vld [vmem:[%s1916_s1 + $0x64] sm:$0xf0]  ;;  %v1390_v14 = vld [vmem:[%s1916_s1 + $0xe0] sm:$0xf]  ;;  %v1436_v18 = vld [vmem:[%s1916_s1 + $0x64] sm:$0xf] }
  0x10   : > { %v1453_v15 = vld [vmem:[%s1916_s1 + $0xe4] sm:$0xf0]  ;;  %707 = vmatpush.bf16.msra.mxu1 %v1399_v7  ;;  %756 = vmatpush.bf16.msra.mxu2 %v1339_v8  ;;  %v1327_v16 = vor.u32 %v1437_v13, %v1326_v11  ;;  %v1328_v19 = vld [vmem:[%s1916_s1 + $0x68] sm:$0xf0]  ;;  %v1452_v20 = vld [vmem:[%s1916_s1 + $0xe4] sm:$0xf] }
  0x11   : > { %v1391_v17 = vor.u32 %v1453_v15, %v1390_v14  ;;  %805 = vmatpush.bf16.msra.mxu3 %v1403_v12  ;;  %v1331_v21 = vor.u32 %v1436_v18, %v1328_v19  ;;  %v1392_v22 = vld [vmem:[%s1916_s1 + $0xe8] sm:$0xf0]  ;;  %v1318_v23 = vld [vmem:[%s1916_s1 + $0x50] sm:$0xf]  ;;  %v1435_v24 = vld [vmem:[%s1916_s1 + $0x54] sm:$0xf0] }
  0x12   : > { %v1395_v25 = vor.u32 %v1452_v20, %v1392_v22  ;;  %v1382_v26 = vld [vmem:[%s1916_s1 + $0xd0] sm:$0xf]  ;;  %v1451_v27 = vld [vmem:[%s1916_s1 + $0xd4] sm:$0xf0]  ;;  %v1434_v28 = vld [vmem:[%s1916_s1 + $0x54] sm:$0xf]  ;;  %v1319_v29 = vor.u32 %v1435_v24, %v1318_v23 }
  0x13   : > { %659 = vmatpush.bf16.msra.mxu0 %v1327_v16  ;;  %v1320_v30 = vld [vmem:[%s1916_s1 + $0x58] sm:$0xf0]  ;;  %v1450_v31 = vld [vmem:[%s1916_s1 + $0xd4] sm:$0xf]  ;;  %v1383_v33 = vor.u32 %v1451_v27, %v1382_v26  ;;  %v1310_v35 = vld [vmem:[%s1916_s1 + $0x40] sm:$0xf] }
  0x14   : > { %v1384_v32 = vld [vmem:[%s1916_s1 + $0xd8] sm:$0xf0]  ;;  %708 = vmatpush.bf16.msra.mxu1 %v1391_v17  ;;  %757 = vmatpush.bf16.msra.mxu2 %v1331_v21  ;;  %v1323_v34 = vor.u32 %v1434_v28, %v1320_v30  ;;  %v1433_v36 = vld [vmem:[%s1916_s1 + $0x44] sm:$0xf0]  ;;  %v1374_v37 = vld [vmem:[%s1916_s1 + $0xc0] sm:$0xf] }
  0x15   : > { %806 = vmatpush.bf16.msra.mxu3 %v1395_v25  ;;  %v1387_v38 = vor.u32 %v1450_v31, %v1384_v32  ;;  %v1449_v39 = vld [vmem:[%s1916_s1 + $0xc4] sm:$0xf0]  ;;  %v1432_v40 = vld [vmem:[%s1916_s1 + $0x44] sm:$0xf]  ;;  %v1312_v41 = vld [vmem:[%s1916_s1 + $0x48] sm:$0xf0]  ;;  %v1311_v44 = vor.u32 %v1433_v36, %v1310_v35 }
  0x16   : > { %v1448_v42 = vld [vmem:[%s1916_s1 + $0xc4] sm:$0xf]  ;;  %v1376_v43 = vld [vmem:[%s1916_s1 + $0xc8] sm:$0xf0]  ;;  %v1375_v45 = vor.u32 %v1449_v39, %v1374_v37  ;;  %v1315_v46 = vor.u32 %v1432_v40, %v1312_v41  ;;  %v1302_v47 = vld [vmem:[%s1916_s1 + $0x30] sm:$0xf] }
  0x17   : > { %660 = vmatpush.bf16.msra.mxu0 %v1319_v29  ;;  %v1431_v48 = vld [vmem:[%s1916_s1 + $0x34] sm:$0xf0]  ;;  %v1366_v49 = vld [vmem:[%s1916_s1 + $0xb0] sm:$0xf]  ;;  %v1379_v50 = vor.u32 %v1448_v42, %v1376_v43  ;;  %v1430_v52 = vld [vmem:[%s1916_s1 + $0x34] sm:$0xf] }
  0x18   : > { %709 = vmatpush.bf16.msra.mxu1 %v1383_v33  ;;  %758 = vmatpush.bf16.msra.mxu2 %v1323_v34  ;;  %v1447_v51 = vld [vmem:[%s1916_s1 + $0xb4] sm:$0xf0]  ;;  %v1304_v53 = vld [vmem:[%s1916_s1 + $0x38] sm:$0xf0]  ;;  %v1446_v54 = vld [vmem:[%s1916_s1 + $0xb4] sm:$0xf]  ;;  %v1303_v56 = vor.u32 %v1431_v48, %v1302_v47 }
  0x19   : > { %807 = vmatpush.bf16.msra.mxu3 %v1387_v38  ;;  %v1368_v55 = vld [vmem:[%s1916_s1 + $0xb8] sm:$0xf0]  ;;  %v1367_v57 = vor.u32 %v1447_v51, %v1366_v49  ;;  %v1307_v58 = vor.u32 %v1430_v52, %v1304_v53  ;;  %v1294_v59 = vld [vmem:[%s1916_s1 + $0x20] sm:$0xf]  ;;  %v1429_v60 = vld [vmem:[%s1916_s1 + $0x24] sm:$0xf0] }
  0x1a   : > { %v1358_v61 = vld [vmem:[%s1916_s1 + $0xa0] sm:$0xf]  ;;  %v1371_v62 = vor.u32 %v1446_v54, %v1368_v55  ;;  %v1445_v63 = vld [vmem:[%s1916_s1 + $0xa4] sm:$0xf0]  ;;  %v1428_v0 = vld [vmem:[%s1916_s1 + $0x24] sm:$0xf]  ;;  %v1295_v4 = vor.u32 %v1429_v60, %v1294_v59 }
  0x1b   : > { %661 = vmatpush.bf16.msra.mxu0 %v1311_v44  ;;  %v1296_v1 = vld [vmem:[%s1916_s1 + $0x28] sm:$0xf0]  ;;  %v1444_v2 = vld [vmem:[%s1916_s1 + $0xa4] sm:$0xf]  ;;  %v1286_v5 = vld [vmem:[%s1916_s1 + $0x10] sm:$0xf]  ;;  %v1359_v6 = vor.u32 %v1445_v63, %v1358_v61 }
  0x1c   : > { %710 = vmatpush.bf16.msra.mxu1 %v1375_v45  ;;  %759 = vmatpush.bf16.msra.mxu2 %v1315_v46  ;;  %v1360_v3 = vld [vmem:[%s1916_s1 + $0xa8] sm:$0xf0]  ;;  %v1299_v7 = vor.u32 %v1428_v0, %v1296_v1  ;;  %v1427_v8 = vld [vmem:[%s1916_s1 + $0x14] sm:$0xf0]  ;;  %v1350_v9 = vld [vmem:[%s1916_s1 + $0x90] sm:$0xf] }
  0x1d   : > { %808 = vmatpush.bf16.msra.mxu3 %v1379_v50  ;;  %v1443_v10 = vld [vmem:[%s1916_s1 + $0x94] sm:$0xf0]  ;;  %v1363_v11 = vor.u32 %v1444_v2, %v1360_v3  ;;  %v1426_v12 = vld [vmem:[%s1916_s1 + $0x14] sm:$0xf]  ;;  %v1288_v13 = vld [vmem:[%s1916_s1 + $0x18] sm:$0xf0]  ;;  %v1287_v16 = vor.u32 %v1427_v8, %v1286_v5 }
  0x1e   : > { %v1442_v14 = vld [vmem:[%s1916_s1 + $0x94] sm:$0xf]  ;;  %v1352_v15 = vld [vmem:[%s1916_s1 + $0x98] sm:$0xf0]  ;;  %v1278_v17 = vld [vmem:[%s1916_s1] sm:$0xf]  ;;  %v1351_v18 = vor.u32 %v1443_v10, %v1350_v9  ;;  %v1291_v19 = vor.u32 %v1426_v12, %v1288_v13 }
  0x1f   : > { %662 = vmatpush.bf16.msra.mxu0 %v1303_v56  ;;  %v1425_v20 = vld [vmem:[%s1916_s1 + $0x4] sm:$0xf0]  ;;  %v1342_v21 = vld [vmem:[%s1916_s1 + $0x80] sm:$0xf]  ;;  %s1924_s5 = smov (!%p240_p4, %s1204_s5), 31  ;;  %v1355_v22 = vor.u32 %v1442_v14, %v1352_v15  ;;  %vm321_vm0 = vcmask 7168  }
  0x20   : > { %711 = vmatpush.bf16.msra.mxu1 %v1367_v57  ;;  %760 = vmatpush.bf16.msra.mxu2 %v1307_v58  ;;  %v1441_v23 = vld [vmem:[%s1916_s1 + $0x84] sm:$0xf0]  ;;  %v1424_v24 = vld [vmem:[%s1916_s1 + $0x4] sm:$0xf]  ;;  %v1280_v25 = vld [vmem:[%s1916_s1 + $0x8] sm:$0xf0]  ;;  %v1279_v28 = vor.u32 %v1425_v20, %v1278_v17 }
  0x21   : > { %809 = vmatpush.bf16.msra.mxu3 %v1371_v62  ;;  %v1440_v26 = vld [vmem:[%s1916_s1 + $0x84] sm:$0xf]  ;;  %v1344_v27 = vld [vmem:[%s1916_s1 + $0x88] sm:$0xf0]  ;;  %s1406_s29 = sshll.u32 %s1924_s5, 3  ;;  %v1343_v29 = vor.u32 %v1441_v23, %v1342_v21  ;;  %v1283_v30 = vor.u32 %v1424_v24, %v1280_v25  ;;  %s1407_s7 = sshll.u32 %s1924_s5, 4 }
  0x22   : > { %s1747_s6 = scalar_lea.vmem %s1915_s0, %s1406_s29  ;;  %v1347_v34 = vor.u32 %v1440_v26, %v1344_v27  ;;  %s1785_s10 = scalar_lea.vmem %s1917_s2, %s1407_s7 }
  0x23   : > { %663 = vmatpush.bf16.msra.mxu0 %v1295_v4  ;;  %v1214_v31 = vld [vmem:[%s1747_s6] sm:$0xf]  ;;  %v1409_v32 = vld [vmem:[%s1747_s6 + $0x4] sm:$0xf0]  ;;  %v1408_v33 = vld [vmem:[%s1747_s6 + $0x4] sm:$0xf]  ;;  %s1813_s16 = scalar_lea.vmem %s1918_s3, %s1406_s29 }
  0x24   : > { %712 = vmatpush.bf16.msra.mxu1 %v1359_v6  ;;  %761 = vmatpush.bf16.msra.mxu2 %v1299_v7  ;;  %v1216_v35 = vld [vmem:[%s1747_s6 + $0x8] sm:$0xf0]  ;;  %v1215_v36 = vor.u32 %v1409_v32, %v1214_v31  ;;  %v1222_v38 = vld [vmem:[%s1747_s6 + $0x10] sm:$0xf]  ;;  %v1411_v39 = vld [vmem:[%s1747_s6 + $0x14] sm:$0xf0] }
  0x25   : > { %810 = vmatpush.bf16.msra.mxu3 %v1363_v11  ;;  %v1219_v37 = vor.u32 %v1408_v33, %v1216_v35  ;;  %v1410_v40 = vld [vmem:[%s1747_s6 + $0x14] sm:$0xf]  ;;  %v1224_v41 = vld [vmem:[%s1747_s6 + $0x18] sm:$0xf0]  ;;  %v1223_v42 = vor.u32 %v1411_v39, %v1222_v38  ;;  %v1230_v44 = vld [vmem:[%s1747_s6 + $0x20] sm:$0xf] }
  0x26   : > { %v1227_v43 = vor.u32 %v1410_v40, %v1224_v41  ;;  %v1413_v45 = vld [vmem:[%s1747_s6 + $0x24] sm:$0xf0]  ;;  %v1412_v46 = vld [vmem:[%s1747_s6 + $0x24] sm:$0xf]  ;;  %v1232_v47 = vld [vmem:[%s1747_s6 + $0x28] sm:$0xf0] }
  0x27   : > { %664 = vmatpush.bf16.msra.mxu0 %v1287_v16  ;;  %v1231_v48 = vor.u32 %v1413_v45, %v1230_v44  ;;  %v1235_v49 = vor.u32 %v1412_v46, %v1232_v47  ;;  %v1238_v50 = vld [vmem:[%s1747_s6 + $0x30] sm:$0xf]  ;;  %v1415_v51 = vld [vmem:[%s1747_s6 + $0x34] sm:$0xf0]  ;;  %v1414_v52 = vld [vmem:[%s1747_s6 + $0x34] sm:$0xf] }
  0x28   : > { %713 = vmatpush.bf16.msra.mxu1 %v1351_v18  ;;  %762 = vmatpush.bf16.msra.mxu2 %v1291_v19  ;;  %v1240_v53 = vld [vmem:[%s1747_s6 + $0x38] sm:$0xf0]  ;;  %v1239_v54 = vor.u32 %v1415_v51, %v1238_v50  ;;  %v1246_v56 = vld [vmem:[%s1747_s6 + $0x40] sm:$0xf]  ;;  %v1417_v57 = vld [vmem:[%s1747_s6 + $0x44] sm:$0xf0] }
  0x29   : > { %811 = vmatpush.bf16.msra.mxu3 %v1355_v22  ;;  %v1243_v55 = vor.u32 %v1414_v52, %v1240_v53  ;;  %v1416_v58 = vld [vmem:[%s1747_s6 + $0x44] sm:$0xf]  ;;  %v1248_v59 = vld [vmem:[%s1747_s6 + $0x48] sm:$0xf0]  ;;  %v1247_v60 = vor.u32 %v1417_v57, %v1246_v56  ;;  %v1254_v62 = vld [vmem:[%s1747_s6 + $0x50] sm:$0xf] }
  0x2a   : > { %v1251_v61 = vor.u32 %v1416_v58, %v1248_v59  ;;  %v1419_v63 = vld [vmem:[%s1747_s6 + $0x54] sm:$0xf0]  ;;  %v1418_v0 = vld [vmem:[%s1747_s6 + $0x54] sm:$0xf]  ;;  %v1256_v1 = vld [vmem:[%s1747_s6 + $0x58] sm:$0xf0] }
  0x2b   : > { %665 = vmatpush.bf16.msra.mxu0 %v1279_v28  ;;  %v1255_v2 = vor.u32 %v1419_v63, %v1254_v62  ;;  %v1259_v3 = vor.u32 %v1418_v0, %v1256_v1  ;;  %v1262_v4 = vld [vmem:[%s1747_s6 + $0x60] sm:$0xf]  ;;  %v1421_v5 = vld [vmem:[%s1747_s6 + $0x64] sm:$0xf0]  ;;  %v1420_v6 = vld [vmem:[%s1747_s6 + $0x64] sm:$0xf] }
  0x2c   : > { %714 = vmatpush.bf16.msra.mxu1 %v1343_v29  ;;  %763 = vmatpush.bf16.msra.mxu2 %v1283_v30  ;;  %v1264_v7 = vld [vmem:[%s1747_s6 + $0x68] sm:$0xf0]  ;;  %v1263_v8 = vor.u32 %v1421_v5, %v1262_v4  ;;  %v1270_v10 = vld [vmem:[%s1747_s6 + $0x70] sm:$0xf]  ;;  %v1423_v11 = vld [vmem:[%s1747_s6 + $0x74] sm:$0xf0] }
  0x2d   : > { %812 = vmatpush.bf16.msra.mxu3 %v1347_v34  ;;  %v1267_v9 = vor.u32 %v1420_v6, %v1264_v7  ;;  %v1422_v12 = vld [vmem:[%s1747_s6 + $0x74] sm:$0xf]  ;;  %v1272_v13 = vld [vmem:[%s1747_s6 + $0x78] sm:$0xf0]  ;;  %v1271_v14 = vor.u32 %v1423_v11, %v1270_v10 }
  0x2e   : > { %666 = vmatmul.bf16.vlgmr.msra.gmra.mxu0 %v1215_v36  ;;  %v1275_v15 = vor.u32 %v1422_v12, %v1272_v13 }
  0x2f   : > { %715 = vmatmul.bf16.vlgmr.msra.gmra.mxu1 %v1219_v37  ;;  %764 = vmatmul.bf16.vlgmr.msra.gmra.mxu2 %v1215_v36 }
  0x30   : > { %813 = vmatmul.bf16.vlgmr.msra.gmra.mxu3 %v1219_v37 }
  0x3e   : > { %671 = vmatmul.bf16.gmra.mxu0 %v1223_v42 }
  0x3f   : > { %720 = vmatmul.bf16.gmra.mxu1 %v1227_v43  ;;  %769 = vmatmul.bf16.gmra.mxu2 %v1223_v42 }
  0x40   : > { %818 = vmatmul.bf16.gmra.mxu3 %v1227_v43 }
  0x4e   : > { %676 = vmatmul.bf16.gmra.mxu0 %v1231_v48 }
  0x4f   : > { %725 = vmatmul.bf16.gmra.mxu1 %v1235_v49  ;;  %774 = vmatmul.bf16.gmra.mxu2 %v1231_v48 }
  0x50   : > { %823 = vmatmul.bf16.gmra.mxu3 %v1235_v49 }
  0x5e   : > { %681 = vmatmul.bf16.gmra.mxu0 %v1239_v54 }
  0x5f   : > { %730 = vmatmul.bf16.gmra.mxu1 %v1243_v55  ;;  %779 = vmatmul.bf16.gmra.mxu2 %v1239_v54 }
  0x60   : > { %828 = vmatmul.bf16.gmra.mxu3 %v1243_v55 }
  0x6e   : > { %686 = vmatmul.bf16.gmra.mxu0 %v1247_v60 }
  0x6f   : > { %735 = vmatmul.bf16.gmra.mxu1 %v1251_v61  ;;  %784 = vmatmul.bf16.gmra.mxu2 %v1247_v60 }
  0x70   : > { %833 = vmatmul.bf16.gmra.mxu3 %v1251_v61 }
  0x7e   : > { %691 = vmatmul.bf16.gmra.mxu0 %v1255_v2 }
  0x7f   : > { %740 = vmatmul.bf16.gmra.mxu1 %v1259_v3  ;;  %789 = vmatmul.bf16.gmra.mxu2 %v1255_v2 }
  0x80   : > { %838 = vmatmul.bf16.gmra.mxu3 %v1259_v3 }
  0x8e   : > { %696 = vmatmul.bf16.gmra.mxu0 %v1263_v8 }
  0x8f   : > { %745 = vmatmul.bf16.gmra.mxu1 %v1267_v9  ;;  %794 = vmatmul.bf16.gmra.mxu2 %v1263_v8 }
  0x90   : > { %843 = vmatmul.bf16.gmra.mxu3 %v1267_v9 }
  0x9e   : > { %701 = vmatmul.bf16.gmra.mxu0 %v1271_v14 }
  0x9f   : > { %750 = vmatmul.bf16.gmra.mxu1 %v1275_v15  ;;  %799 = vmatmul.bf16.gmra.mxu2 %v1271_v14 }
  0xa0   : > { %848 = vmatmul.bf16.gmra.mxu3 %v1275_v15 }
  0xab   : > { %v667_v16 = vpop.f32.mrf.mxu0 }
  0xac   : > { %v716_v17 = vpop.f32.mrf.mxu1 }
  0xad   : > { %v717_v18 = vadd.f32 %v716_v17, %v667_v16 }
  0xaf   : > { %886 = vst [vmem:[%s1785_s10] sm:$0xff] %v717_v18 }
  0xb2   : > { %v765_v19 = vpop.f32.mrf.mxu2 }
  0xb3   : > { %v814_v20 = vpop.f32.mrf.mxu3  ;;  %v669_v21 = vpop.f32.mrf.mxu0 }
  0xb4   : > { %v815_v22 = vadd.f32 %v814_v20, %v765_v19  ;;  %v718_v23 = vpop.f32.mrf.mxu1 }
  0xb5   : > { %v719_v24 = vadd.f32 %v718_v23, %v669_v21 }
  0xb6   : > { %887 = vst [vmem:[%s1785_s10 + $0x8] sm:$0xff] %v815_v22  ;;  %v969_v25 = vadd.f32 %v815_v22, %v717_v18 }
  0xb7   : > { %888 = vst [vmem:[%s1785_s10 + $0x10] sm:$0xff] %v719_v24 }
  0xb8   : > { %970 = vadd.xlane.f32.xlu0 %v969_v25 }
  0xba   : > { %v767_v26 = vpop.f32.mrf.mxu2 }
  0xbb   : > { %v816_v27 = vpop.f32.mrf.mxu3  ;;  %v672_v28 = vpop.f32.mrf.mxu0 }
  0xbc   : > { %v817_v29 = vadd.f32 %v816_v27, %v767_v26  ;;  %v721_v30 = vpop.f32.mrf.mxu1 }
  0xbd   : > { %v722_v31 = vadd.f32 %v721_v30, %v672_v28 }
  0xbe   : > { %889 = vst [vmem:[%s1785_s10 + $0x18] sm:$0xff] %v817_v29  ;;  %v972_v32 = vadd.f32 %v817_v29, %v719_v24 }
  0xbf   : > { %890 = vst [vmem:[%s1785_s10 + $0x20] sm:$0xff] %v722_v31 }
  0xc0   : > { %973 = vadd.xlane.f32.xlu0 %v972_v32 }
  0xc2   : > { %v770_v33 = vpop.f32.mrf.mxu2 }
  0xc3   : > { %v819_v34 = vpop.f32.mrf.mxu3  ;;  %v674_v35 = vpop.f32.mrf.mxu0 }
  0xc4   : > { %v820_v36 = vadd.f32 %v819_v34, %v770_v33  ;;  %v723_v37 = vpop.f32.mrf.mxu1 }
  0xc5   : > { %v724_v38 = vadd.f32 %v723_v37, %v674_v35 }
  0xc6   : > { %891 = vst [vmem:[%s1785_s10 + $0x28] sm:$0xff] %v820_v36  ;;  %v975_v39 = vadd.f32 %v820_v36, %v722_v31  ;;  %v1505_v31 = vmov 0.0  }
  0xc7   : > { %892 = vst [vmem:[%s1785_s10 + $0x30] sm:$0xff] %v724_v38 }
  0xc8   : > { %976 = vadd.xlane.f32.xlu1 %v975_v39  ;;  %322 = vst.msk [vmem:[%s1813_s16] sm:$0xff] %vm321_vm0, %v1505_v31 }
  0xc9   : > { %323 = vst.msk [vmem:[%s1813_s16 + $0x8] sm:$0xff] %vm321_vm0, %v1505_v31 }
  0xca   : > { %v772_v40 = vpop.f32.mrf.mxu2  ;;  %324 = vst.msk [vmem:[%s1813_s16 + $0x10] sm:$0xff] %vm321_vm0, %v1505_v31 }
  0xcb   : > { %v821_v41 = vpop.f32.mrf.mxu3  ;;  %v677_v42 = vpop.f32.mrf.mxu0  ;;  %325 = vst.msk [vmem:[%s1813_s16 + $0x18] sm:$0xff] %vm321_vm0, %v1505_v31 }
  0xcc   : > { %v822_v43 = vadd.f32 %v821_v41, %v772_v40  ;;  %v726_v44 = vpop.f32.mrf.mxu1  ;;  %326 = vst.msk [vmem:[%s1813_s16 + $0x20] sm:$0xff] %vm321_vm0, %v1505_v31 }
  0xcd   : > { %v727_v45 = vadd.f32 %v726_v44, %v677_v42  ;;  %327 = vst.msk [vmem:[%s1813_s16 + $0x28] sm:$0xff] %vm321_vm0, %v1505_v31 }
  0xce   : > { %893 = vst [vmem:[%s1785_s10 + $0x38] sm:$0xff] %v822_v43  ;;  %v978_v46 = vadd.f32 %v822_v43, %v724_v38 }
  0xcf   : > { %894 = vst [vmem:[%s1785_s10 + $0x40] sm:$0xff] %v727_v45 }
  0xd0   : > { %979 = vadd.xlane.f32.xlu1 %v978_v46  ;;  %328 = vst.msk [vmem:[%s1813_s16 + $0x30] sm:$0xff] %vm321_vm0, %v1505_v31 }
  0xd1   : > { %329 = vst.msk [vmem:[%s1813_s16 + $0x38] sm:$0xff] %vm321_vm0, %v1505_v31 }
  0xd2   : > { %v775_v47 = vpop.f32.mrf.mxu2  ;;  %330 = vst.msk [vmem:[%s1813_s16 + $0x40] sm:$0xff] %vm321_vm0, %v1505_v31 }
  0xd3   : > { %v824_v48 = vpop.f32.mrf.mxu3  ;;  %v679_v49 = vpop.f32.mrf.mxu0  ;;  %331 = vst.msk [vmem:[%s1813_s16 + $0x48] sm:$0xff] %vm321_vm0, %v1505_v31 }
  0xd4   : > { %v825_v50 = vadd.f32 %v824_v48, %v775_v47  ;;  %v728_v51 = vpop.f32.mrf.mxu1  ;;  %332 = vst.msk [vmem:[%s1813_s16 + $0x50] sm:$0xff] %vm321_vm0, %v1505_v31 }
  0xd5   : > { %v729_v52 = vadd.f32 %v728_v51, %v679_v49  ;;  %333 = vst.msk [vmem:[%s1813_s16 + $0x58] sm:$0xff] %vm321_vm0, %v1505_v31 }
  0xd6   : > { %895 = vst [vmem:[%s1785_s10 + $0x48] sm:$0xff] %v825_v50  ;;  %v981_v53 = vadd.f32 %v825_v50, %v727_v45 }
  0xd7   : > { %896 = vst [vmem:[%s1785_s10 + $0x50] sm:$0xff] %v729_v52 }
  0xd8   : > { %982 = vadd.xlane.f32.xlu2 %v981_v53  ;;  %334 = vst.msk [vmem:[%s1813_s16 + $0x60] sm:$0xff] %vm321_vm0, %v1505_v31 }
  0xd9   : > { %335 = vst.msk [vmem:[%s1813_s16 + $0x68] sm:$0xff] %vm321_vm0, %v1505_v31 }
  0xda   : > { %v777_v54 = vpop.f32.mrf.mxu2  ;;  %336 = vst.msk [vmem:[%s1813_s16 + $0x70] sm:$0xff] %vm321_vm0, %v1505_v31 }
  0xdb   : > { %v826_v55 = vpop.f32.mrf.mxu3  ;;  %v682_v56 = vpop.f32.mrf.mxu0  ;;  %337 = vst.msk [vmem:[%s1813_s16 + $0x78] sm:$0xff] %vm321_vm0, %v1505_v31  ;;  %v931_v31 = vld [vmem:[%s1813_s16 + $0x50] sm:$0xff] }
  0xdc   : > { %v827_v57 = vadd.f32 %v826_v55, %v777_v54  ;;  %v731_v58 = vpop.f32.mrf.mxu1 }
  0xdd   : > { %v732_v59 = vadd.f32 %v731_v58, %v682_v56 }
  0xde   : > { %897 = vst [vmem:[%s1785_s10 + $0x58] sm:$0xff] %v827_v57  ;;  %v984_v60 = vadd.f32 %v827_v57, %v729_v52 }
  0xdf   : > { %898 = vst [vmem:[%s1785_s10 + $0x60] sm:$0xff] %v732_v59 }
  0xe0   : > { %985 = vadd.xlane.f32.xlu2 %v984_v60 }
  0xe2   : > { %v780_v61 = vpop.f32.mrf.mxu2 }
  0xe3   : > { %v829_v62 = vpop.f32.mrf.mxu3  ;;  %v684_v63 = vpop.f32.mrf.mxu0 }
  0xe4   : > { %v830_v0 = vadd.f32 %v829_v62, %v780_v61  ;;  %v733_v1 = vpop.f32.mrf.mxu1 }
  0xe5   : > { %v734_v2 = vadd.f32 %v733_v1, %v684_v63  ;;  %v921_v63 = vld [vmem:[%s1813_s16] sm:$0xff] }
  0xe6   : > { %899 = vst [vmem:[%s1785_s10 + $0x68] sm:$0xff] %v830_v0  ;;  %v987_v3 = vadd.f32 %v830_v0, %v732_v59 }
  0xe7   : > { %900 = vst [vmem:[%s1785_s10 + $0x70] sm:$0xff] %v734_v2 }
  0xe8   : > { %988 = vadd.xlane.f32.xlu0 %v987_v3 }
  0xea   : > { %v782_v4 = vpop.f32.mrf.mxu2 }
  0xeb   : > { %v831_v5 = vpop.f32.mrf.mxu3  ;;  %v687_v6 = vpop.f32.mrf.mxu0 }
  0xec   : > { %v832_v7 = vadd.f32 %v831_v5, %v782_v4  ;;  %v736_v8 = vpop.f32.mrf.mxu1  ;;  %v922_v4 = vld [vmem:[%s1813_s16 + $0x8] sm:$0xff] }
  0xed   : > { %v737_v9 = vadd.f32 %v736_v8, %v687_v6 }
  0xee   : > { %901 = vst [vmem:[%s1785_s10 + $0x78] sm:$0xff] %v832_v7  ;;  %v990_v10 = vadd.f32 %v832_v7, %v734_v2  ;;  %v923_v7 = vld [vmem:[%s1813_s16 + $0x10] sm:$0xff] }
  0xef   : > { %902 = vst [vmem:[%s1785_s10 + $0x80] sm:$0xff] %v737_v9 }
  0xf0   : > { %991 = vadd.xlane.f32.xlu1 %v990_v10  ;;  %v924_v10 = vld [vmem:[%s1813_s16 + $0x18] sm:$0xff] }
  0xf2   : > { %v785_v11 = vpop.f32.mrf.mxu2 }
  0xf3   : > { %v834_v12 = vpop.f32.mrf.mxu3  ;;  %v689_v13 = vpop.f32.mrf.mxu0 }
  0xf4   : > { %v835_v14 = vadd.f32 %v834_v12, %v785_v11  ;;  %v738_v15 = vpop.f32.mrf.mxu1 }
  0xf5   : > { %v739_v16 = vadd.f32 %v738_v15, %v689_v13  ;;  %v925_v13 = vld [vmem:[%s1813_s16 + $0x20] sm:$0xff] }
  0xf6   : > { %903 = vst [vmem:[%s1785_s10 + $0x88] sm:$0xff] %v835_v14  ;;  %v993_v17 = vadd.f32 %v835_v14, %v737_v9 }
  0xf7   : > { %904 = vst [vmem:[%s1785_s10 + $0x90] sm:$0xff] %v739_v16 }
  0xf8   : > { %994 = vadd.xlane.f32.xlu2 %v993_v17 }
  0xfa   : > { %v787_v18 = vpop.f32.mrf.mxu2 }
  0xfb   : > { %v836_v19 = vpop.f32.mrf.mxu3  ;;  %v692_v20 = vpop.f32.mrf.mxu0 }
  0xfc   : > { %v837_v21 = vadd.f32 %v836_v19, %v787_v18  ;;  %v741_v22 = vpop.f32.mrf.mxu1  ;;  %v927_v19 = vld [vmem:[%s1813_s16 + $0x30] sm:$0xff] }
  0xfd   : > { %v742_v23 = vadd.f32 %v741_v22, %v692_v20  ;;  %v928_v22 = vld [vmem:[%s1813_s16 + $0x38] sm:$0xff] }
  0xfe   : > { %905 = vst [vmem:[%s1785_s10 + $0x98] sm:$0xff] %v837_v21  ;;  %v996_v24 = vadd.f32 %v837_v21, %v739_v16  ;;  %v926_v16 = vld [vmem:[%s1813_s16 + $0x28] sm:$0xff] }
  0xff   : > { %906 = vst [vmem:[%s1785_s10 + $0xa0] sm:$0xff] %v742_v23 }
 0x100   : > { %997 = vadd.xlane.f32.xlu0 %v996_v24 }
 0x102   : > { %v790_v25 = vpop.f32.mrf.mxu2 }
 0x103   : > { %v839_v26 = vpop.f32.mrf.mxu3  ;;  %v694_v27 = vpop.f32.mrf.mxu0 }
 0x104   : > { %v840_v28 = vadd.f32 %v839_v26, %v790_v25  ;;  %v743_v29 = vpop.f32.mrf.mxu1  ;;  %v929_v25 = vld [vmem:[%s1813_s16 + $0x40] sm:$0xff] }
 0x105   : > { %v744_v30 = vadd.f32 %v743_v29, %v694_v27 }
 0x106   : > { %907 = vst [vmem:[%s1785_s10 + $0xa8] sm:$0xff] %v840_v28  ;;  %v999_v32 = vadd.f32 %v840_v28, %v742_v23  ;;  %v930_v28 = vld [vmem:[%s1813_s16 + $0x48] sm:$0xff] }
 0x107   : > { %908 = vst [vmem:[%s1785_s10 + $0xb0] sm:$0xff] %v744_v30 }
 0x108   : > { %1000 = vadd.xlane.f32.xlu1 %v999_v32 }
 0x10a   : > { %v792_v33 = vpop.f32.mrf.mxu2 }
 0x10b   : > { %v841_v34 = vpop.f32.mrf.mxu3  ;;  %v697_v35 = vpop.f32.mrf.mxu0 }
 0x10c   : > { %v842_v36 = vadd.f32 %v841_v34, %v792_v33  ;;  %v746_v37 = vpop.f32.mrf.mxu1  ;;  %v932_v34 = vld [vmem:[%s1813_s16 + $0x58] sm:$0xff] }
 0x10d   : > { %v747_v38 = vadd.f32 %v746_v37, %v697_v35  ;;  %v933_v37 = vld [vmem:[%s1813_s16 + $0x60] sm:$0xff] }
 0x10e   : > { %909 = vst [vmem:[%s1785_s10 + $0xb8] sm:$0xff] %v842_v36  ;;  %v1002_v39 = vadd.f32 %v842_v36, %v744_v30 }
 0x10f   : > { %910 = vst [vmem:[%s1785_s10 + $0xc0] sm:$0xff] %v747_v38 }
 0x110   : > { %1003 = vadd.xlane.f32.xlu2 %v1002_v39 }
 0x112   : > { %v795_v40 = vpop.f32.mrf.mxu2 }
 0x113   : > { %v844_v41 = vpop.f32.mrf.mxu3  ;;  %v699_v42 = vpop.f32.mrf.mxu0 }
 0x114   : > { %v845_v43 = vadd.f32 %v844_v41, %v795_v40  ;;  %v748_v44 = vpop.f32.mrf.mxu1  ;;  %v934_v40 = vld [vmem:[%s1813_s16 + $0x68] sm:$0xff] }
 0x115   : > { %v749_v45 = vadd.f32 %v748_v44, %v699_v42 }
 0x116   : > { %911 = vst [vmem:[%s1785_s10 + $0xc8] sm:$0xff] %v845_v43  ;;  %v1005_v46 = vadd.f32 %v845_v43, %v747_v38  ;;  %v935_v43 = vld [vmem:[%s1813_s16 + $0x70] sm:$0xff] }
 0x117   : > { %912 = vst [vmem:[%s1785_s10 + $0xd0] sm:$0xff] %v749_v45 }
 0x118   : > { %1006 = vadd.xlane.f32.xlu0 %v1005_v46  ;;  %v936_v46 = vld [vmem:[%s1813_s16 + $0x78] sm:$0xff] }
 0x11a   : > { %v797_v47 = vpop.f32.mrf.mxu2 }
 0x11b   : > { %v846_v48 = vpop.f32.mrf.mxu3  ;;  %v702_v49 = vpop.f32.mrf.mxu0 }
 0x11c   : > { %v847_v50 = vadd.f32 %v846_v48, %v797_v47  ;;  %v751_v51 = vpop.f32.mrf.mxu1 }
 0x11d   : > { %v752_v52 = vadd.f32 %v751_v51, %v702_v49 }
 0x11e   : > { %913 = vst [vmem:[%s1785_s10 + $0xd8] sm:$0xff] %v847_v50  ;;  %v1008_v53 = vadd.f32 %v847_v50, %v749_v45 }
 0x11f   : > { %914 = vst [vmem:[%s1785_s10 + $0xe0] sm:$0xff] %v752_v52 }
 0x120   : > { %1009 = vadd.xlane.f32.xlu1 %v1008_v53 }
 0x122   : > { %v800_v54 = vpop.f32.mrf.mxu2 }
 0x123   : > { %v849_v55 = vpop.f32.mrf.mxu3  ;;  %v704_v56 = vpop.f32.mrf.mxu0 }
 0x124   : > { %v850_v57 = vadd.f32 %v849_v55, %v800_v54  ;;  %v753_v58 = vpop.f32.mrf.mxu1 }
 0x125   : > { %v754_v59 = vadd.f32 %v753_v58, %v704_v56 }
 0x126   : > { %915 = vst [vmem:[%s1785_s10 + $0xe8] sm:$0xff] %v850_v57  ;;  %v1011_v60 = vadd.f32 %v850_v57, %v752_v52 }
 0x127   : > { %916 = vst [vmem:[%s1785_s10 + $0xf0] sm:$0xff] %v754_v59 }
 0x128   : > { %1012 = vadd.xlane.f32.xlu2 %v1011_v60 }
 0x12a   : > { %v802_v61 = vpop.f32.mrf.mxu2 }
 0x12b   : > { %v851_v62 = vpop.f32.mrf.mxu3  ;;  %v971_v1 = vpop.xlane.xlu0 %970 }
 0x12c   : > { %v852_v0 = vadd.f32 %v851_v62, %v802_v61  ;;  %v1017_v2 = vadd.f32 %v971_v1, %v921_v63 }
 0x12e   : > { %917 = vst [vmem:[%s1785_s10 + $0xf8] sm:$0xff] %v852_v0  ;;  %v1014_v3 = vadd.f32 %v852_v0, %v754_v59 }
 0x12f   : > { %1034 = vst.msk [vmem:[%s1813_s16] sm:$0xff] %vm321_vm0, %v1017_v2 }
 0x130   : > { %1015 = vadd.xlane.f32.xlu0 %v1014_v3 }
 0x133   : > { %v974_v5 = vpop.xlane.xlu0 %973 }
 0x134   : > { %v1018_v6 = vadd.f32 %v974_v5, %v922_v4 }
 0x136   : > { %1035 = vst.msk [vmem:[%s1813_s16 + $0x8] sm:$0xff] %vm321_vm0, %v1018_v6 }
 0x13b   : > { %v977_v8 = vpop.xlane.xlu1 %976 }
 0x13c   : > { %v1019_v9 = vadd.f32 %v977_v8, %v923_v7 }
 0x13e   : > { %1036 = vst.msk [vmem:[%s1813_s16 + $0x10] sm:$0xff] %vm321_vm0, %v1019_v9 }
 0x143   : > { %v980_v11 = vpop.xlane.xlu1 %979 }
 0x144   : > { %v1020_v12 = vadd.f32 %v980_v11, %v924_v10 }
 0x146   : > { %1037 = vst.msk [vmem:[%s1813_s16 + $0x18] sm:$0xff] %vm321_vm0, %v1020_v12 }
 0x14b   : > { %v983_v14 = vpop.xlane.xlu2 %982 }
 0x14c   : > { %v1021_v15 = vadd.f32 %v983_v14, %v925_v13 }
 0x14e   : > { %1038 = vst.msk [vmem:[%s1813_s16 + $0x20] sm:$0xff] %vm321_vm0, %v1021_v15 }
 0x153   : > { %v986_v17 = vpop.xlane.xlu2 %985 }
 0x154   : > { %v1022_v18 = vadd.f32 %v986_v17, %v926_v16 }
 0x156   : > { %1039 = vst.msk [vmem:[%s1813_s16 + $0x28] sm:$0xff] %vm321_vm0, %v1022_v18 }
 0x15b   : > { %v989_v20 = vpop.xlane.xlu0 %988 }
 0x15c   : > { %v1023_v21 = vadd.f32 %v989_v20, %v927_v19 }
 0x15e   : > { %1040 = vst.msk [vmem:[%s1813_s16 + $0x30] sm:$0xff] %vm321_vm0, %v1023_v21 }
 0x163   : > { %v992_v23 = vpop.xlane.xlu1 %991 }
 0x164   : > { %v1024_v24 = vadd.f32 %v992_v23, %v928_v22 }
 0x166   : > { %1041 = vst.msk [vmem:[%s1813_s16 + $0x38] sm:$0xff] %vm321_vm0, %v1024_v24 }
 0x16b   : > { %v995_v26 = vpop.xlane.xlu2 %994 }
 0x16c   : > { %v1025_v27 = vadd.f32 %v995_v26, %v929_v25 }
 0x16e   : > { %1042 = vst.msk [vmem:[%s1813_s16 + $0x40] sm:$0xff] %vm321_vm0, %v1025_v27 }
 0x173   : > { %v998_v29 = vpop.xlane.xlu0 %997 }
 0x174   : > { %v1026_v30 = vadd.f32 %v998_v29, %v930_v28 }
 0x176   : > { %1043 = vst.msk [vmem:[%s1813_s16 + $0x48] sm:$0xff] %vm321_vm0, %v1026_v30 }
 0x17b   : > { %v1001_v32 = vpop.xlane.xlu1 %1000 }
 0x17c   : > { %v1027_v33 = vadd.f32 %v1001_v32, %v931_v31 }
 0x17e   : > { %1044 = vst.msk [vmem:[%s1813_s16 + $0x50] sm:$0xff] %vm321_vm0, %v1027_v33 }
 0x183   : > { %v1004_v35 = vpop.xlane.xlu2 %1003 }
 0x184   : > { %v1028_v36 = vadd.f32 %v1004_v35, %v932_v34 }
 0x186   : > { %1045 = vst.msk [vmem:[%s1813_s16 + $0x58] sm:$0xff] %vm321_vm0, %v1028_v36 }
 0x18b   : > { %v1007_v38 = vpop.xlane.xlu0 %1006 }
 0x18c   : > { %v1029_v39 = vadd.f32 %v1007_v38, %v933_v37 }
 0x18e   : > { %1046 = vst.msk [vmem:[%s1813_s16 + $0x60] sm:$0xff] %vm321_vm0, %v1029_v39 }
 0x193   : > { %v1010_v41 = vpop.xlane.xlu1 %1009 }
 0x194   : > { %v1030_v42 = vadd.f32 %v1010_v41, %v934_v40 }
 0x196   : > { %1047 = vst.msk [vmem:[%s1813_s16 + $0x68] sm:$0xff] %vm321_vm0, %v1030_v42 }
 0x19b   : > { %v1013_v44 = vpop.xlane.xlu2 %1012 }
 0x19c   : > { %v1031_v45 = vadd.f32 %v1013_v44, %v935_v43 }
 0x19e   : > { %1048 = vst.msk [vmem:[%s1813_s16 + $0x70] sm:$0xff] %vm321_vm0, %v1031_v45 }
 0x1a3   : > { %v1016_v47 = vpop.xlane.xlu0 %1015 }
 0x1a4   : > { %v1032_v48 = vadd.f32 %v1016_v47, %v936_v46 }
 0x1a6   : > { %1049 = vst.msk [vmem:[%s1813_s16 + $0x78] sm:$0xff] %vm321_vm0, %v1032_v48 }
 0x1a7 PF: > { %s14_s14 = sadd.s32 1, %s1503_s14   ;;  %s1919_s12 = smov %s1499_s13 }
 0x1a8   : > { %p11_p5 = scmp.ge.s32.totalorder %s14_s14, 4   ;;  %s1920_s13 = smov %s1922_s15 }
 0x1aa   :  { %13 = sbr.rel (!%p11_p5) target bundleno = 2 (0x2), region = 85 }

</bundles_post_ra>
